<compile_context>
chip_gen: v7x
topology: tpu7x:2x2x1
jax: 0.10.0
libtpu: 0.0.40
codegen_flags: <defaults>
</compile_context>

<pallas_src>
import jax
import jax.numpy as jnp
from jax.experimental import pallas as pl
from jax.experimental.pallas import tpu as pltpu


def _attr_head_kernel(x_ref, w_ref, b_ref, o_ref):
    # x_ref: (TB, C, HW)  NCHW view, HW on the lane axis
    # w_ref: (C, 12)      fused eyes/nose/mouth weights (transposed, pre-scaled by 1/HW)
    # b_ref: (1, 12)      fused bias
    # o_ref: (TB, 12)
    # Global average pool: cross-lane (XLU) reduce over HW with f32 accumulation.
    # No full-tile f32 copy is materialized.
    feat = jnp.sum(x_ref[...], axis=-1, dtype=jnp.float32)            # (TB, C)
    # Fused eyes/nose/mouth linear layers on the MXU (1/HW already folded into w).
    logits = jnp.dot(feat, w_ref[...], preferred_element_type=jnp.float32)
    o_ref[...] = logits + b_ref[...]                                   # broadcast (1,12)


def _pick_batch_tile(B, C, HW, itemsize, target_tile_bytes=4 << 20):
    """Batch tile so one (padded) x tile is ~4 MiB of VMEM.

    Accounts for lane padding (HW -> mult of 128) and sublane padding (C -> mult
    of 8). Caps tb so the grid has >=2 steps when B >= 16 (v7x megacore sharding).
    """
    padded_c = -(-C // 8) * 8
    padded_hw = -(-HW // 128) * 128
    row_bytes = padded_c * padded_hw * itemsize
    rows = max(1, target_tile_bytes // row_bytes)

    if B >= 16:
        # keep at least 2 grid steps so "parallel" semantics can use both TCs (v7x)
        half = max(8, ((B // 2) // 8) * 8)
    else:
        half = B

    if rows >= B:
        return min(B, half)
    tb = max(8, (rows // 8) * 8)
    return min(tb, half)


def attribute_header_forward(x, w_eyes, b_eyes, w_nose, b_nose, w_mouth, b_mouth):
    """x: (B, C, H, W) NCHW. Linear weights are PyTorch-convention (out=4, in=C)."""
    B, C, H, W = x.shape
    HW = H * W
    itemsize = jnp.dtype(x.dtype).itemsize

    # Free view of NCHW: no data movement, no extra HBM traffic.
    x_chw = x.reshape(B, C, HW)

    # Fuse three linears and fold the 1/HW pooling scale into the weight:
    #   logits = (sum_hw(x)/HW) @ W_all^T + b_all  ==  sum_hw(x) @ (W_all^T / HW) + b_all
    w_all = jnp.concatenate([w_eyes, w_nose, w_mouth], axis=0)        # (12, C)
    b_all = jnp.concatenate([b_eyes, b_nose, b_mouth], axis=0)        # (12,)
    w_t = (w_all.T.astype(jnp.float32)) * (1.0 / HW)                  # (C, 12)
    b_2d = b_all.reshape(1, 12).astype(jnp.float32)

    tb = _pick_batch_tile(B, C, HW, itemsize)
    grid = (pl.cdiv(B, tb),)

    cost = pl.CostEstimate(
        flops=B * C * HW + 2 * B * C * 12 + B * 12,
        transcendentals=0,
        bytes_accessed=B * C * HW * itemsize + C * 12 * 4 + 12 * 4 + B * 12 * 4,
    )

    out = pl.pallas_call(
        _attr_head_kernel,
        out_shape=jax.ShapeDtypeStruct((B, 12), jnp.float32),
        grid_spec=pltpu.PrefetchScalarGridSpec(
            num_scalar_prefetch=0,
            grid=grid,
            in_specs=[
                pl.BlockSpec((tb, C, HW), lambda i: (i, 0, 0)),
                pl.BlockSpec((C, 12), lambda i: (0, 0)),
                pl.BlockSpec((1, 12), lambda i: (0, 0)),
            ],
            out_specs=pl.BlockSpec((tb, 12), lambda i: (i, 0)),
        ),
        compiler_params=pltpu.CompilerParams(
            # batch tiles are independent -> megacore sharding on v7x
            dimension_semantics=("parallel",),
            # 2 x ~4 MiB double-buffered x tiles + weights/temps; safe on v5e/v6e/v7x
            vmem_limit_bytes=32 << 20,
        ),
        cost_estimate=cost,
    )(x_chw, w_t, b_2d)

    return out.reshape(B, 3, 4)


def _reference(x, w_eyes, b_eyes, w_nose, b_nose, w_mouth, b_mouth):
    B = x.shape[0]
    feat = jnp.mean(x.astype(jnp.float32), axis=(2, 3))               # (B, C)
    eyes = feat @ w_eyes.T + b_eyes
    nose = feat @ w_nose.T + b_nose
    mouth = feat @ w_mouth.T + b_mouth
    return jnp.concatenate([eyes, nose, mouth], axis=1).reshape(B, 3, 4)


if __name__ == "__main__":
    B, C, H, W = 2, 32, 8, 8  # small shapes; in_channels=32 instead of default 512

    key = jax.random.PRNGKey(0)
    kx, ke, kn, km, kbe, kbn, kbm = jax.random.split(key, 7)

    x = jax.random.normal(kx, (B, C, H, W), dtype=jnp.float32)

    # Deterministic parameter init (PyTorch Linear convention: weight (out, in))
    w_eyes = jax.random.normal(ke, (4, C), dtype=jnp.float32) * 0.05
    w_nose = jax.random.normal(kn, (4, C), dtype=jnp.float32) * 0.05
    w_mouth = jax.random.normal(km, (4, C), dtype=jnp.float32) * 0.05
    b_eyes = jax.random.normal(kbe, (4,), dtype=jnp.float32) * 0.05
    b_nose = jax.random.normal(kbn, (4,), dtype=jnp.float32) * 0.05
    b_mouth = jax.random.normal(kbm, (4,), dtype=jnp.float32) * 0.05

    out = attribute_header_forward(x, w_eyes, b_eyes, w_nose, b_nose, w_mouth, b_mouth)
    out = jax.block_until_ready(out)

    ref = _reference(x, w_eyes, b_eyes, w_nose, b_nose, w_mouth, b_mouth)
    assert out.shape == (B, 3, 4), out.shape
    assert jnp.allclose(out, ref, atol=1e-4, rtol=1e-4), jnp.max(jnp.abs(out - ref))

    print("KERNEL_OK")
</pallas_src>

<mosaic_0001>
module attributes {stable_mosaic.version = 11 : i64} {
  func.func @_attr_head_kernel(%arg0: i32, %arg1: memref<2x32x64xf32, #tpu.memory_space<vmem>>, %arg2: memref<32x12xf32, #tpu.memory_space<vmem>>, %arg3: memref<1x12xf32, #tpu.memory_space<vmem>>, %arg4: memref<2x12xf32, #tpu.memory_space<vmem>>) attributes {dimension_semantics = [#tpu.dimension_semantics<parallel>], iteration_bounds = array<i64: 1>, scalar_prefetch = 0 : i64, scratch_operands = 0 : i64, tpu.core_type = #tpu.core_type<tc>, window_params = [{transform_indices = @transform_0, window_bounds = array<i64: 2, 32, 64>}, {pipeline_mode = #tpu.pipeline_mode<synchronous>, transform_indices = @transform_1, window_bounds = array<i64: 32, 12>}, {pipeline_mode = #tpu.pipeline_mode<synchronous>, transform_indices = @transform_2, window_bounds = array<i64: 1, 12>}, {transform_indices = @transform_3, window_bounds = array<i64: 2, 12>}]} {
    %c0 = arith.constant 0 : index
    %c0_0 = arith.constant 0 : index
    %c0_1 = arith.constant 0 : index
    %0 = vector.load %arg1[%c0, %c0_0, %c0_1] : memref<2x32x64xf32, #tpu.memory_space<vmem>>, vector<2x32x64xf32>
    %cst = arith.constant dense<0.000000e+00> : vector<2x32xf32>
    %1 = vector.multi_reduction <add>, %0, %cst [2] : vector<2x32x64xf32> to vector<2x32xf32>
    %c0_2 = arith.constant 0 : index
    %c0_3 = arith.constant 0 : index
    %2 = vector.load %arg2[%c0_2, %c0_3] : memref<32x12xf32, #tpu.memory_space<vmem>>, vector<32x12xf32>
    %cst_4 = arith.constant dense<0.000000e+00> : vector<2x12xf32>
    %3 = tpu.matmul %1, %2, %cst_4 {dimension_numbers = #tpu.dot_dimension_numbers<[1], [0], [0], [1], [0, 0, 1, 1], [], []>} : vector<2x32xf32>, vector<32x12xf32>, vector<2x12xf32> -> vector<2x12xf32>
    %c0_5 = arith.constant 0 : index
    %c0_6 = arith.constant 0 : index
    %4 = vector.load %arg3[%c0_5, %c0_6] : memref<1x12xf32, #tpu.memory_space<vmem>>, vector<1x12xf32>
    %5 = vector.broadcast %4 : vector<1x12xf32> to vector<2x12xf32>
    %6 = arith.addf %3, %5 : vector<2x12xf32>
    %c0_7 = arith.constant 0 : index
    %c0_8 = arith.constant 0 : index
    %7 = vector.load %arg4[%c0_7, %c0_8] : memref<2x12xf32, #tpu.memory_space<vmem>>, vector<2x12xf32>
    tpu.vector_store %arg4[%c0_7, %c0_8], %6 {strides = array<i32>} : memref<2x12xf32, #tpu.memory_space<vmem>>, vector<2x12xf32>,
    return
  }
  func.func @transform_0(%arg0: i32) -> (i32, i32, i32) {
    %c0_i32 = arith.constant 0 : i32
    %c0_i32_0 = arith.constant 0 : i32
    %c0_i32_1 = arith.constant 0 : i32
    return %arg0, %c0_i32, %c0_i32_0 : i32, i32, i32
  }
  func.func @transform_1(%arg0: i32) -> (i32, i32) {
    %c0_i32 = arith.constant 0 : i32
    %c0_i32_0 = arith.constant 0 : i32
    %c0_i32_1 = arith.constant 0 : i32
    return %c0_i32, %c0_i32_0 : i32, i32
  }
  func.func @transform_2(%arg0: i32) -> (i32, i32) {
    %c0_i32 = arith.constant 0 : i32
    %c0_i32_0 = arith.constant 0 : i32
    %c0_i32_1 = arith.constant 0 : i32
    return %c0_i32, %c0_i32_0 : i32, i32
  }
  func.func @transform_3(%arg0: i32) -> (i32, i32) {
    %c0_i32 = arith.constant 0 : i32
    %c0_i32_0 = arith.constant 0 : i32
    return %arg0, %c0_i32 : i32, i32
  }
}

</mosaic_0001>

<bundles_post_ra>
// kernel: tpu_custom_call.1
= control target key start
LH: loop header
LB: loop body
LE: loop exit
PB: predicated region body
PF: predicated region fallthrough
CT: control target
= control target key end

     0   :  { %8 = vsyncpa [#allocation3], 0  ;;  %s372_s0 = inlined_call_operand.hbm [shape: f32[2,32,64], index: 0, kind: input, shape index: {}]   ;;  %s373_s1 = inlined_call_operand.vmem [shape: f32[32,12], index: 1, kind: input, shape index: {}]   ;;  %s374_s2 = inlined_call_operand.vmem [shape: f32[1,12], index: 2, kind: input, shape index: {}]   ;;  %s375_s3 = inlined_call_operand.hbm [shape: f32[2,12], index: 3, kind: output, shape index: {}]  }
   0x1   :  { %9 = vsyncpa [#allocation4], 0  ;;  %s298_s12 = smov [#allocation2]   ;;  %s250_s16 = scalar_lea.hbm %s372_s0, 1024 }
   0x2   :  { %s15_s13 = sshll.u32 %s298_s12, 4  ;;  %p251_p0 = scmp.ne.s32.totalorder %s372_s0, %s250_s16  ;;  %s16_s13 = int_to_ptr.vmem [resolvable:$true] %s15_s13 }
   0x3   :  { %p254_p1 = scmp.lt.u32.totalorder %s250_s16, %s372_s0 }
   0x5   :  { %p256_p2 = pnand %p254_p1, %p251_p0 }
   0x7   :  { %259 = shalt.err (!%p256_p2)
}
   0x8   :  { %s260_s21 = scalar_lea.vmem %s16_s13, 1024  ;;  %p265_p4 = scmp.lt.s32.totalorder %s16_s13, %s16_s13 }
   0x9   :  { %p261_p3 = scmp.ne.s32.totalorder %s16_s13, %s260_s21  ;;  %p266_p5 = scmp.lt.s32.totalorder %s260_s21, %s260_s21 }
   0xb   :  { %p267_p6 = por %p266_p5, %p265_p4 }
   0xd   :  { %p268_p7 = pnand %p267_p6, %p261_p3 }
   0xf   :  { %271 = shalt.err (!%p268_p7)
}
  0x10   :  { %s299_s22 = smov 128   ;;  %s300_s23 = smov 8  }
  0x11   :  { %21 = dma.hbm_to_vmem [thread:$0]  %s372_s0, 1024, %s16_s13, [#allocation3], %s299_s22, %s299_s22, %s300_s23  }
  0x12   :  { %294 = dma.done.wait [#allocation3], 1024  }
  0x13   :  { %295 = vsyncadd [#allocation3], 4294966272  ;;  %vm37_vm0 = vcmask 523264   ;;  %v33_v0 = vld [vmem:[#allocation2 + $0x20] sm:$0xff]  ;;  %v34_v2 = vld [vmem:[#allocation2 + $0x28] sm:$0xff]  ;;  %v301_v19 = vmov 0.0|0.0   ;;  %v81_v24 = vlaneseq }
  0x14   :  { %v29_v1 = vld [vmem:[#allocation2] sm:$0xff]  ;;  %v50_v3 = vsel %vm37_vm0, %v33_v0, 0.0  ;;  %v30_v5 = vld [vmem:[#allocation2 + $0x8] sm:$0xff]  ;;  %v53_v6 = vsel %vm37_vm0, %v34_v2, 0.0  ;;  %v35_v8 = vld [vmem:[#allocation2 + $0x30] sm:$0xff]  ;;  %237 = vmatprep.subr.bf16.mxu0 %v301_v19  ;;  %vm302_vm1 = vmmov 0  }
  0x15   :  { %v38_v4 = vsel %vm37_vm0, %v29_v1, 0.0  ;;  %51 = vadd.xlane.f32.xlu1 %v50_v3  ;;  %v41_v7 = vsel %vm37_vm0, %v30_v5, 0.0  ;;  %v31_v9 = vld [vmem:[#allocation2 + $0x10] sm:$0xff]  ;;  %v56_v10 = vsel %vm37_vm0, %v35_v8, 0.0  ;;  %v36_v12 = vld [vmem:[#allocation2 + $0x38] sm:$0xff]  ;;  %v62_v16 = vld [vmem:[%s373_s1] sm:$0xff] }
  0x16   :  { %39 = vadd.xlane.f32.xlu0 %v38_v4  ;;  %v44_v11 = vsel %vm37_vm0, %v31_v9, 0.0  ;;  %v32_v13 = vld [vmem:[#allocation2 + $0x18] sm:$0xff]  ;;  %v59_v14 = vsel %vm37_vm0, %v36_v12, 0.0  ;;  %v63_v17 = vld [vmem:[%s373_s1 + $0x8] sm:$0xff]  ;;  %v64_v20 = vld [vmem:[%s373_s1 + $0x10] sm:$0xff]  ;;  %v303_v23 = vmov 0.0  }
  0x17   :  { %v47_v15 = vsel %vm37_vm0, %v32_v13, 0.0  ;;  %v238_v18 = vpack.c.bf16 %v63_v17, %v62_v16  ;;  %v65_v21 = vld [vmem:[%s373_s1 + $0x18] sm:$0xff]  ;;  %234 = vmatprep.mubr.msk.f32.mxu0 %vm302_vm1, %v303_v23  ;;  %v82_v25 = vand.u32 127, %v81_v24  ;;  %v84_v30 = vshrl.u32 %v81_v24, 7  ;;  %v219_v57 = vld [vmem:[%s374_s2] ss:$0 sm:$0xff] }
  0x18   :  { %v241_v22 = vpack.c.bf16 %v65_v21, %v64_v20  ;;  %vm92_vm2 = vcmask 130112   ;;  %vm99_vm3 = vcmask 195712   ;;  %vm106_vm4 = vcmask 261312   ;;  %s304_s7 = smov [#allocation5]  }
  0x19   :  { %54 = vadd.xlane.f32.xlu1 %v53_v6  ;;  %239 = vmatpush3.bf16.msra.mxu0 %v238_v18  ;;  %v87_v28 = vadd.s32 4294967288, %v82_v25  ;;  %v94_v29 = vadd.s32 4294967280, %v82_v25  ;;  %v101_v34 = vadd.s32 4294967272, %v82_v25  ;;  %v85_v36 = vsub.s32 %v82_v25, %v84_v30  ;;  %s210_s8 = sshll.u32 %s304_s7, 4  ;;  %s211_s8 = int_to_ptr.vmem [resolvable:$true] %s210_s8 }
  0x1a   :  { %42 = vadd.xlane.f32.xlu0 %v41_v7  ;;  %240 = vmatprep.subr.bf16.mxu0 %v301_v19  ;;  %vm127_vm5 = vcmask 1041409   ;;  %vm129_vm6 = vcmask 261120   ;;  %vm202_vm7 = vcmask 91136   ;;  %s272_s9 = scalar_lea.vmem %s211_s8, 32  ;;  %p277_p9 = scmp.lt.s32.totalorder %s211_s8, %s211_s8 }
  0x1b   :  { %v90_v33 = vsub.s32 %v87_v28, %v84_v30  ;;  %v97_v35 = vsub.s32 %v94_v29, %v84_v30  ;;  %v104_v41 = vsub.s32 %v101_v34, %v84_v30  ;;  %p273_p8 = scmp.ne.s32.totalorder %s211_s8, %s272_s9  ;;  %p278_p10 = scmp.lt.s32.totalorder %s272_s9, %s272_s9 }
  0x1d   :  { %57 = vadd.xlane.f32.xlu1 %v56_v10  ;;  %242 = vmatpush3.bf16.msra.mxu0 %v241_v22  ;;  %p279_p11 = por %p278_p10, %p277_p9 }
  0x1e   :  { %45 = vadd.xlane.f32.xlu0 %v44_v11 }
  0x1f   :  { %p280_p12 = pnand %p279_p11, %p273_p8 }
  0x21   :  { %60 = vadd.xlane.f32.xlu1 %v59_v14 }
  0x22   :  { %48 = vadd.xlane.f32.xlu0 %v47_v15 }
  0xa2   :  { %v52_v26 = vpop.xlane.xlu1 %51 }
  0xa3   :  { %v40_v27 = vpop.xlane.xlu0 %39  ;;  %v111_v44 = vrot.slane %v52_v26, %v85_v36 }
  0xa4   :  { %v86_v45 = vrot.slane %v40_v27, %v85_v36 }
  0xa6   :  { %v55_v31 = vpop.xlane.xlu1 %54 }
  0xa7   :  { %v43_v32 = vpop.xlane.xlu0 %42  ;;  %v115_v39 = vrot.slane %v55_v31, %v90_v33 }
  0xa8   :  { %v91_v40 = vrot.slane %v43_v32, %v90_v33 }
  0xa9   :  { %v116_v48 = vsel %vm92_vm2, %v115_v39, %v111_v44 }
  0xaa   :  { %v58_v37 = vpop.xlane.xlu1 %57  ;;  %v93_v49 = vsel %vm92_vm2, %v91_v40, %v86_v45 }
  0xab   :  { %v46_v38 = vpop.xlane.xlu0 %45  ;;  %v120_v42 = vrot.slane %v58_v37, %v97_v35 }
  0xac   :  { %v98_v43 = vrot.slane %v46_v38, %v97_v35 }
  0xad   :  { %v121_v52 = vsel %vm99_vm3, %v120_v42, %v116_v48 }
  0xae   :  { %v61_v46 = vpop.xlane.xlu1 %60  ;;  %v100_v53 = vsel %vm99_vm3, %v98_v43, %v93_v49 }
  0xaf   :  { %v49_v47 = vpop.xlane.xlu0 %48  ;;  %v125_v50 = vrot.slane %v61_v46, %v104_v41 }
  0xb0   :  { %v105_v51 = vrot.slane %v49_v47, %v104_v41 }
  0xb1   :  { %v126_v54 = vsel %vm106_vm4, %v125_v50, %v121_v52 }
  0xb2   :  { %v107_v55 = vsel %vm106_vm4, %v105_v51, %v100_v53 }
  0xb3   :  { %v128_v56 = vsel %vm127_vm5, %v126_v54, %v107_v55 }
  0xb4   :  { %235 = vmatmul.mubr.msk.f32.vlgmr.msra.gmra.mrb[0].mxu0 %vm129_vm6, %v128_v56 }
 0x187   :  { %v198_v58 = vpop.f32.mrb[0].mxu0 }
 0x188   :  { %v199_v59 = vadd.f32 %v219_v57, %v198_v58  ;;  %v236_v60 = vpop.f32.mrb[1].mxu0 }
 0x18a   :  { %203 = vst.msk [vmem:[#allocation5] sm:$0x3] %vm202_vm7, %v199_v59 }
 0x18b   :  { %283 = shalt.err (!%p280_p12)
}
 0x18c   :  { %s284_s12 = scalar_lea.hbm %s375_s3, 32 }
 0x18d   :  { %p285_p13 = scmp.ne.s32.totalorder %s375_s3, %s284_s12  ;;  %p288_p0 = scmp.lt.u32.totalorder %s284_s12, %s375_s3 }
 0x18f   :  { %p290_p1 = pnand %p288_p0, %p285_p13 }
 0x191   :  { %293 = shalt.err (!%p290_p1)
}
 0x192   :  { %213 = dma.vmem_to_hbm [thread:$0]  %s211_s8, 32, %s375_s3, [#allocation4]  }
 0x193   :  { %296 = dma.done.wait [#allocation4], 32  }
 0x194   :  { %297 = vsyncadd [#allocation4], 4294967264 }
 0x195   :  { %217 = vsyncpa [#allocation3], 1 }
 0x196   :  { %218 = vsyncpa [#allocation4], 1 }

</bundles_post_ra>
